<compile_context>
chip_gen: v5e
topology: v5e:2x2
jax: 0.10.0
libtpu: 0.0.40
codegen_flags: <defaults>
</compile_context>

<pallas_src>
import jax
import jax.numpy as jnp
from jax.experimental import pallas as pl
from jax.experimental.pallas import tpu as pltpu


def _thresholded_relu_kernel(t_ref, x_ref, o_ref):
    # F.threshold(x, t, 0): x if x > t (strict) else 0.
    x = x_ref[...]
    t = t_ref[0, 0]
    o_ref[...] = jnp.where(x > t, x, jnp.zeros_like(x))


def _round_up(a, b):
    return ((a + b - 1) // b) * b


def thresholded_relu(x, threshold=0.1):
    """Elementwise thresholded ReLU via Pallas. Works for any shape (NCHW etc.)."""
    orig_shape = x.shape
    dtype = x.dtype
    total = x.size

    # Sublane packing: 8 rows for 4-byte, 16 for 2-byte, 32 for 1-byte dtypes.
    itemsize = jnp.dtype(dtype).itemsize
    sub = max(8, 32 // itemsize)

    # Lane-dense column width: multiple of 128, up to 1024; shrink for tiny inputs
    # so we do not over-pad.
    lane = 128
    cols = 1024
    while cols > lane and total < cols * sub:
        cols //= 2

    # Rows of the slab; tile rows in blocks of `tm` (multiple of `sub`,
    # <= 512 -> block <= 2 MiB f32 at cols=1024, so in+out double-buffered
    # tiles fit comfortably under v5e/v6e/v7x scoped-VMEM defaults).
    rows = -(-total // cols)
    tm = min(512, _round_up(rows, sub))
    rows_padded = _round_up(rows, tm)
    padded_total = rows_padded * cols

    x_flat = x.reshape(-1)
    if padded_total != total:
        x_flat = jnp.pad(x_flat, (0, padded_total - total))
    x2d = x_flat.reshape(rows_padded, cols)

    # Runtime threshold scalar in SMEM (no recompilation when it changes).
    t_arr = jnp.full((1, 1), threshold, dtype=jnp.float32)

    grid = (rows_padded // tm,)

    out2d = pl.pallas_call(
        _thresholded_relu_kernel,
        out_shape=jax.ShapeDtypeStruct((rows_padded, cols), dtype),
        grid_spec=pl.GridSpec(
            grid=grid,
            in_specs=[
                pl.BlockSpec(memory_space=pltpu.MemorySpace.SMEM),  # threshold
                pl.BlockSpec((tm, cols), lambda i: (i, 0)),          # x tile
            ],
            out_specs=pl.BlockSpec((tm, cols), lambda i: (i, 0)),
        ),
        compiler_params=pltpu.CompilerParams(
            # Elementwise: every grid step is independent -> let Mosaic shard
            # the row axis across TensorCores on multi-core chips (v7x).
            dimension_semantics=("parallel",),
        ),
    )(t_arr, x2d)

    out_flat = out2d.reshape(-1)
    if padded_total != total:
        out_flat = out_flat[:total]
    return out_flat.reshape(orig_shape)


if __name__ == "__main__":
    key = jax.random.PRNGKey(0)
    # Small NCHW input consistent with the module's typical usage.
    x = jax.random.normal(key, (2, 4, 16, 16), dtype=jnp.float32)

    out = thresholded_relu(x, threshold=0.1)
    out = jax.block_until_ready(out)

    # Reference check in plain JAX (strict '>' like F.threshold).
    ref = jnp.where(x > 0.1, x, 0.0)
    assert out.shape == x.shape
    assert jnp.allclose(out, ref), "mismatch vs reference"

    # Second check: different threshold and a shape whose H*W is not a
    # multiple of 128 (exercises the lane-dense padding path).
    x2 = jax.random.normal(jax.random.PRNGKey(1), (2, 3, 7, 7), dtype=jnp.float32)
    out2 = jax.block_until_ready(thresholded_relu(x2, threshold=-0.25))
    ref2 = jnp.where(x2 > -0.25, x2, 0.0)
    assert out2.shape == x2.shape
    assert jnp.allclose(out2, ref2), "mismatch vs reference (case 2)"

    print("KERNEL_OK")
</pallas_src>

<mosaic_0001>
module attributes {stable_mosaic.version = 11 : i64} {
  func.func @_thresholded_relu_kernel(%arg0: i32, %arg1: memref<1x1xf32, #tpu.memory_space<smem>>, %arg2: memref<8x256xf32, #tpu.memory_space<vmem>>, %arg3: memref<8x256xf32, #tpu.memory_space<vmem>>) attributes {dimension_semantics = [#tpu.dimension_semantics<parallel>], iteration_bounds = array<i64: 1>, scalar_prefetch = 0 : i64, scratch_operands = 0 : i64, tpu.core_type = #tpu.core_type<tc>, window_params = [{transform_indices = @transform_0, window_bounds = array<i64: 1, 1>}, {transform_indices = @transform_1, window_bounds = array<i64: 8, 256>}, {transform_indices = @transform_2, window_bounds = array<i64: 8, 256>}]} {
    %c0 = arith.constant 0 : index
    %c0_0 = arith.constant 0 : index
    %0 = vector.load %arg2[%c0, %c0_0] : memref<8x256xf32, #tpu.memory_space<vmem>>, vector<8x256xf32>
    %c0_1 = arith.constant 0 : index
    %c0_2 = arith.constant 0 : index
    %1 = memref.load %arg1[%c0_1, %c0_2] : memref<1x1xf32, #tpu.memory_space<smem>>
    %2 = vector.broadcast %1 : f32 to vector<8x256xf32>
    %3 = arith.cmpf ogt, %0, %2 : vector<8x256xf32>
    %cst = arith.constant 0.000000e+00 : f32
    %4 = vector.broadcast %cst : f32 to vector<8x256xf32>
    %5 = arith.select %3, %0, %4 : vector<8x256xi1>, vector<8x256xf32>
    %c0_3 = arith.constant 0 : index
    %c0_4 = arith.constant 0 : index
    %6 = vector.load %arg3[%c0_3, %c0_4] : memref<8x256xf32, #tpu.memory_space<vmem>>, vector<8x256xf32>
    tpu.vector_store %arg3[%c0_3, %c0_4], %5 {strides = array<i32>} : memref<8x256xf32, #tpu.memory_space<vmem>>, vector<8x256xf32>,
    return
  }
  func.func @transform_0(%arg0: i32) -> (i32, i32) {
    %c0_i32 = arith.constant 0 : i32
    %c0_i32_0 = arith.constant 0 : i32
    %c0_i32_1 = arith.constant 0 : i32
    return %c0_i32, %c0_i32_0 : i32, i32
  }
  func.func @transform_1(%arg0: i32) -> (i32, i32) {
    %c0_i32 = arith.constant 0 : i32
    %c0_i32_0 = arith.constant 0 : i32
    return %arg0, %c0_i32 : i32, i32
  }
  func.func @transform_2(%arg0: i32) -> (i32, i32) {
    %c0_i32 = arith.constant 0 : i32
    %c0_i32_0 = arith.constant 0 : i32
    return %arg0, %c0_i32 : i32, i32
  }
}

</mosaic_0001>

<bundles_post_ra>
// kernel: tpu_custom_call.1
= control target key start
LH: loop header
LB: loop body
LE: loop exit
PB: predicated region body
PF: predicated region fallthrough
CT: control target
= control target key end

     0   :  { %8 = vsyncpa [#allocation4], 0  ;;  %s134_s0 = inlined_call_operand.<no memory space> [shape: f32[1,1], index: 0, kind: input, shape index: {}]   ;;  %s135_s1 = inlined_call_operand.hbm [shape: f32[8,256], index: 1, kind: input, shape index: {}]   ;;  %s136_s2 = inlined_call_operand.hbm [shape: f32[8,256], index: 2, kind: output, shape index: {}]  }
   0x1   :  { %9 = vsyncpa [#allocation5], 0  ;;  %s17_s11 = sshll.u32 %s135_s1, 4  ;;  %s108_s12 = smov [#allocation3]   ;;  %s18_s11 = int_to_ptr.hbm [resolvable:$true] %s17_s11 }
   0x2   :  { %s19_s13 = sshll.u32 %s108_s12, 4  ;;  %s20_s13 = int_to_ptr.vmem [resolvable:$true] %s19_s13 }
   0x3   :  { %22 = dma.hbm_to_vmem [thread:$0]  %s18_s11, 256, %s20_s13, [#allocation4]  }
   0x4   :  { %104 = dma.done.wait [#allocation4], 256  }
   0x5   :  { %105 = vsyncadd [#allocation4], 4294967040  ;;  %v30_v0 = vstv %s134_s0  ;;  %s109_s16 = smov [#allocation6]   ;;  %s44_s20 = sshll.u32 %s136_s2, 4  ;;  %v27_v1 = vld [vmem:[#allocation3] sm:$0xff]  ;;  %v28_v2 = vld [vmem:[#allocation3 + $0x8] sm:$0xff]  ;;  %s45_s20 = int_to_ptr.hbm [resolvable:$true] %s44_s20 }
   0x6   :  { %s42_s17 = sshll.u32 %s109_s16, 4  ;;  %vm31_vm0 = vcmp.gt.f32.partialorder %v27_v1, %v30_v0  ;;  %vm32_vm1 = vcmp.gt.f32.partialorder %v28_v2, %v30_v0  ;;  %s43_s17 = int_to_ptr.vmem [resolvable:$true] %s42_s17 }
   0x7   :  { %v33_v3 = vsel %vm31_vm0, %v27_v1, 0.0  ;;  %v34_v4 = vsel %vm32_vm1, %v28_v2, 0.0 }
   0x8   :  { %35 = vst [vmem:[#allocation6] sm:$0xff] %v33_v3 }
   0x9   :  { %36 = vst [vmem:[#allocation6 + $0x8] sm:$0xff] %v34_v4 }
   0xa   :  { %47 = dma.vmem_to_hbm [thread:$0]  %s43_s17, 256, %s45_s20, [#allocation5]  }
   0xb   :  { %106 = dma.done.wait [#allocation5], 256  }
   0xc   :  { %107 = vsyncadd [#allocation5], 4294967040 }
   0xd   :  { %52 = vsyncpa [#allocation4], 1 }
   0xe   :  { %53 = vsyncpa [#allocation5], 1 }

</bundles_post_ra>
